<compile_context>
chip_gen: v6e
topology: v6e:2x2x1
jax: 0.10.0
libtpu: 0.0.40
codegen_flags: <defaults>
</compile_context>

<pallas_src>
import functools

import jax
import jax.numpy as jnp
from jax.experimental import pallas as pl
from jax.experimental.pallas import tpu as pltpu


def _residual_block_kernel(x_ref, w1_ref, w2l_ref, w2g_ref,
                           mrow_ref, mcol_ref, o_ref, *, width):
    """Whole batch in one shot; activations are (C, N*H*W) with N*H*W on lanes."""
    C, NHW = x_ref.shape

    x = x_ref[...]                                        # (C, NHW) f32

    # Hoisted, materialized-once mask broadcasts (used by both im2col builds).
    mrow = jnp.broadcast_to(mrow_ref[...], (C, NHW))      # 0.0 where i == 0
    mcol = jnp.broadcast_to(mcol_ref[...], (C, NHW))      # 0.0 where j == 0
    mrc = mrow * mcol
    ones_row = jnp.ones((1, NHW), jnp.float32)            # bias row (K += 1)

    def elu(v):
        return jnp.where(v > 0, v, jnp.exp(v) - 1.0)

    def im2col(a):
        # Causal 2x2 taps of `a` (implicit top/left zero pad), stacked on the
        # sublane axis, plus a ones row so the bias rides the MXU contraction:
        #   rows [0,  C) -> (ki=0, kj=0) = a[i-1, j-1]
        #   rows [C, 2C) -> (ki=0, kj=1) = a[i-1, j  ]
        #   rows [2C,3C) -> (ki=1, kj=0) = a[i,   j-1]
        #   rows [3C,4C) -> (ki=1, kj=1) = a[i,   j  ]
        #   row   4C     -> 1.0          (bias column in the weight matrices)
        # pltpu.roll == jnp.roll along lanes; every wrapped-around entry
        # (including wraps across image boundaries) is a border position that
        # the masks zero out.
        return jnp.concatenate([
            mrc * pltpu.roll(a, width + 1, 1),
            mrow * pltpu.roll(a, width, 1),
            mcol * pltpu.roll(a, 1, 1),
            a,
            ones_row,
        ], axis=0)                                        # (4C + 1, NHW)

    # --- conv1 (C -> C): single MXU dot, bias folded -------------------------
    t1 = im2col(elu(x))
    h1 = jnp.dot(w1_ref[...], t1, preferred_element_type=jnp.float32)

    # --- conv2 (C -> 2C): value half + gate half, biases folded --------------
    t2 = im2col(elu(h1))
    left = jnp.dot(w2l_ref[...], t2, preferred_element_type=jnp.float32)
    gate = jnp.dot(w2g_ref[...], t2, preferred_element_type=jnp.float32)

    # GatedActivation(Identity): left * sigmoid(gate).  tanh form keeps the
    # transcendental on the EUP and avoids a VALU divide (exact math).
    gated = left * (0.5 * jnp.tanh(0.5 * gate) + 0.5)

    o_ref[...] = (x + gated).astype(o_ref.dtype)


@jax.jit
def residual_block(x, w1, b1, w2, b2):
    """PixelSNAIL ResidualBlock forward.

    Args (PyTorch layouts):
      x:  (N, C, H, W) float32
      w1: (C, C, 2, 2)  conv1 weight,  b1: (C,)
      w2: (2C, C, 2, 2) conv2 weight,  b2: (2C,)
    Returns (N, C, H, W).
    """
    N, C, H, W = x.shape
    HW = H * W
    NHW = N * HW

    def to_mat(wt, b):
        # (Cout, Cin, kh, kw) -> (Cout, 4*Cin + 1); column (ki*2+kj)*Cin + ci
        # matches the im2col row order; last column is the bias.
        m = jnp.transpose(wt, (0, 2, 3, 1)).reshape(wt.shape[0], 4 * C)
        return jnp.concatenate([m, b[:, None]], axis=1)

    w1m = to_mat(w1, b1)                    # (C, 4C+1)
    w2m = to_mat(w2, b2)                    # (2C, 4C+1)
    w2l, w2g = w2m[:C], w2m[C:]             # value half / gate half

    # Border masks over the per-image flattened spatial index f = i*W + j,
    # tiled across the batch (the batch lives on lanes too).
    f = jnp.arange(NHW, dtype=jnp.int32) % HW
    mrow = (f >= W).astype(jnp.float32).reshape(1, NHW)          # i > 0
    mcol = ((f % W) != 0).astype(jnp.float32).reshape(1, NHW)    # j > 0

    # (N, C, H, W) -> (C, N*H*W): lane index = n*HW + i*W + j.
    x_flat = jnp.transpose(x, (1, 0, 2, 3)).reshape(C, NHW)

    vmem = pl.BlockSpec(memory_space=pltpu.MemorySpace.VMEM)
    out_flat = pl.pallas_call(
        functools.partial(_residual_block_kernel, width=W),
        out_shape=jax.ShapeDtypeStruct((C, NHW), x.dtype),
        in_specs=[vmem] * 6,
        out_specs=vmem,
    )(x_flat, w1m, w2l, w2g, mrow, mcol)

    return jnp.transpose(out_flat.reshape(C, N, H, W), (1, 0, 2, 3))


def ref_residual_block(x, w1, b1, w2, b2):
    """Pure-JAX reference in PyTorch conventions: NCHW, weights (O, I, kh, kw)."""
    def conv(v, w, b):
        y = jax.lax.conv_general_dilated(
            v, w, window_strides=(1, 1), padding=((1, 1), (1, 1)),
            dimension_numbers=("NCHW", "OIHW", "NCHW"),
            precision=jax.lax.Precision.HIGHEST)
        return y + b[None, :, None, None]

    elu = lambda v: jnp.where(v > 0, v, jnp.exp(v) - 1.0)
    _, c, h, w_ = x.shape
    out = elu(conv(elu(x), w1, b1))[:, :, :h, :w_]
    out = conv(out, w2, b2)[:, :, :h, :w_]
    left, gate = out[:, :c], out[:, c:]
    return x + left * (1.0 / (1.0 + jnp.exp(-gate)))


if __name__ == "__main__":
    N, C, H, W = 2, 4, 16, 16
    key = jax.random.PRNGKey(0)
    k1, k2, k3, k4, k5 = jax.random.split(key, 5)

    # Deterministic synthetic parameters (PyTorch layouts: (Cout, Cin, kh, kw)).
    x = jax.random.normal(k1, (N, C, H, W), jnp.float32)
    w1 = 0.3 * jax.random.normal(k2, (C, C, 2, 2), jnp.float32)
    b1 = 0.1 * jax.random.normal(k3, (C,), jnp.float32)
    w2 = 0.3 * jax.random.normal(k4, (2 * C, C, 2, 2), jnp.float32)
    b2 = 0.1 * jax.random.normal(k5, (2 * C,), jnp.float32)

    y = jax.block_until_ready(residual_block(x, w1, b1, w2, b2))
    y_ref = ref_residual_block(x, w1, b1, w2, b2)
    err = float(jnp.max(jnp.abs(y - y_ref)))
    assert jnp.allclose(y, y_ref, atol=1e-3, rtol=1e-3), f"max_abs_err={err}"

    print("KERNEL_OK")
</pallas_src>

<mosaic_0001>
module attributes {stable_mosaic.version = 11 : i64} {
  func.func @_residual_block_kernel(%arg0: memref<4x512xf32, #tpu.memory_space<vmem>>, %arg1: memref<4x17xf32, #tpu.memory_space<vmem>>, %arg2: memref<4x17xf32, #tpu.memory_space<vmem>>, %arg3: memref<4x17xf32, #tpu.memory_space<vmem>>, %arg4: memref<1x512xf32, #tpu.memory_space<vmem>>, %arg5: memref<1x512xf32, #tpu.memory_space<vmem>>, %arg6: memref<4x512xf32, #tpu.memory_space<vmem>>) attributes {dimension_semantics = [], scalar_prefetch = 0 : i64, scratch_operands = 0 : i64, tpu.core_type = #tpu.core_type<tc>} {
    %c0 = arith.constant 0 : index
    %c0_0 = arith.constant 0 : index
    %0 = vector.load %arg0[%c0, %c0_0] : memref<4x512xf32, #tpu.memory_space<vmem>>, vector<4x512xf32>
    %c0_1 = arith.constant 0 : index
    %c0_2 = arith.constant 0 : index
    %1 = vector.load %arg4[%c0_1, %c0_2] : memref<1x512xf32, #tpu.memory_space<vmem>>, vector<1x512xf32>
    %2 = vector.shape_cast %1 : vector<1x512xf32> to vector<1x512xf32>
    %3 = vector.broadcast %2 : vector<1x512xf32> to vector<4x512xf32>
    %c0_3 = arith.constant 0 : index
    %c0_4 = arith.constant 0 : index
    %4 = vector.load %arg5[%c0_3, %c0_4] : memref<1x512xf32, #tpu.memory_space<vmem>>, vector<1x512xf32>
    %5 = vector.shape_cast %4 : vector<1x512xf32> to vector<1x512xf32>
    %6 = vector.broadcast %5 : vector<1x512xf32> to vector<4x512xf32>
    %7 = arith.mulf %3, %6 : vector<4x512xf32>
    %cst = arith.constant 1.000000e+00 : f32
    %8 = vector.broadcast %cst : f32 to vector<1x512xf32>
    %cst_5 = arith.constant 0.000000e+00 : f32
    %9 = vector.broadcast %cst_5 : f32 to vector<4x512xf32>
    %10 = arith.cmpf ogt, %0, %9 : vector<4x512xf32>
    %11 = math.exp %0 : vector<4x512xf32>
    %cst_6 = arith.constant 1.000000e+00 : f32
    %12 = vector.broadcast %cst_6 : f32 to vector<4x512xf32>
    %13 = arith.subf %11, %12 : vector<4x512xf32>
    %14 = arith.select %10, %0, %13 : vector<4x512xi1>, vector<4x512xf32>
    %c17_i32 = arith.constant 17 : i32
    %15 = tpu.dynamic_rotate %14 by %c17_i32 dim 1 : vector<4x512xf32>, i32 -> vector<4x512xf32>
    %16 = arith.mulf %7, %15 : vector<4x512xf32>
    %c16_i32 = arith.constant 16 : i32
    %17 = tpu.dynamic_rotate %14 by %c16_i32 dim 1 : vector<4x512xf32>, i32 -> vector<4x512xf32>
    %18 = arith.mulf %3, %17 : vector<4x512xf32>
    %c1_i32 = arith.constant 1 : i32
    %19 = tpu.dynamic_rotate %14 by %c1_i32 dim 1 : vector<4x512xf32>, i32 -> vector<4x512xf32>
    %20 = arith.mulf %6, %19 : vector<4x512xf32>
    %21 = tpu.concatenate %16, %18, %20, %14, %8 in 0 : vector<4x512xf32>, vector<4x512xf32>, vector<4x512xf32>, vector<4x512xf32>, vector<1x512xf32> -> vector<17x512xf32>
    %c0_7 = arith.constant 0 : index
    %c0_8 = arith.constant 0 : index
    %22 = vector.load %arg1[%c0_7, %c0_8] : memref<4x17xf32, #tpu.memory_space<vmem>>, vector<4x17xf32>
    %cst_9 = arith.constant dense<0.000000e+00> : vector<4x512xf32>
    %23 = tpu.matmul %22, %21, %cst_9 {dimension_numbers = #tpu.dot_dimension_numbers<[1], [0], [0], [1], [0, 0, 1, 1], [], []>} : vector<4x17xf32>, vector<17x512xf32>, vector<4x512xf32> -> vector<4x512xf32>
    %cst_10 = arith.constant 0.000000e+00 : f32
    %24 = vector.broadcast %cst_10 : f32 to vector<4x512xf32>
    %25 = arith.cmpf ogt, %23, %24 : vector<4x512xf32>
    %26 = math.exp %23 : vector<4x512xf32>
    %cst_11 = arith.constant 1.000000e+00 : f32
    %27 = vector.broadcast %cst_11 : f32 to vector<4x512xf32>
    %28 = arith.subf %26, %27 : vector<4x512xf32>
    %29 = arith.select %25, %23, %28 : vector<4x512xi1>, vector<4x512xf32>
    %c17_i32_12 = arith.constant 17 : i32
    %30 = tpu.dynamic_rotate %29 by %c17_i32_12 dim 1 : vector<4x512xf32>, i32 -> vector<4x512xf32>
    %31 = arith.mulf %7, %30 : vector<4x512xf32>
    %c16_i32_13 = arith.constant 16 : i32
    %32 = tpu.dynamic_rotate %29 by %c16_i32_13 dim 1 : vector<4x512xf32>, i32 -> vector<4x512xf32>
    %33 = arith.mulf %3, %32 : vector<4x512xf32>
    %c1_i32_14 = arith.constant 1 : i32
    %34 = tpu.dynamic_rotate %29 by %c1_i32_14 dim 1 : vector<4x512xf32>, i32 -> vector<4x512xf32>
    %35 = arith.mulf %6, %34 : vector<4x512xf32>
    %36 = tpu.concatenate %31, %33, %35, %29, %8 in 0 : vector<4x512xf32>, vector<4x512xf32>, vector<4x512xf32>, vector<4x512xf32>, vector<1x512xf32> -> vector<17x512xf32>
    %c0_15 = arith.constant 0 : index
    %c0_16 = arith.constant 0 : index
    %37 = vector.load %arg2[%c0_15, %c0_16] : memref<4x17xf32, #tpu.memory_space<vmem>>, vector<4x17xf32>
    %cst_17 = arith.constant dense<0.000000e+00> : vector<4x512xf32>
    %38 = tpu.matmul %37, %36, %cst_17 {dimension_numbers = #tpu.dot_dimension_numbers<[1], [0], [0], [1], [0, 0, 1, 1], [], []>} : vector<4x17xf32>, vector<17x512xf32>, vector<4x512xf32> -> vector<4x512xf32>
    %c0_18 = arith.constant 0 : index
    %c0_19 = arith.constant 0 : index
    %39 = vector.load %arg3[%c0_18, %c0_19] : memref<4x17xf32, #tpu.memory_space<vmem>>, vector<4x17xf32>
    %cst_20 = arith.constant dense<0.000000e+00> : vector<4x512xf32>
    %40 = tpu.matmul %39, %36, %cst_20 {dimension_numbers = #tpu.dot_dimension_numbers<[1], [0], [0], [1], [0, 0, 1, 1], [], []>} : vector<4x17xf32>, vector<17x512xf32>, vector<4x512xf32> -> vector<4x512xf32>
    %cst_21 = arith.constant 5.000000e-01 : f32
    %41 = vector.broadcast %cst_21 : f32 to vector<4x512xf32>
    %42 = arith.mulf %41, %40 : vector<4x512xf32>
    %43 = math.tanh %42 : vector<4x512xf32>
    %cst_22 = arith.constant 5.000000e-01 : f32
    %44 = vector.broadcast %cst_22 : f32 to vector<4x512xf32>
    %45 = arith.mulf %44, %43 : vector<4x512xf32>
    %cst_23 = arith.constant 5.000000e-01 : f32
    %46 = vector.broadcast %cst_23 : f32 to vector<4x512xf32>
    %47 = arith.addf %45, %46 : vector<4x512xf32>
    %48 = arith.mulf %38, %47 : vector<4x512xf32>
    %49 = arith.addf %0, %48 : vector<4x512xf32>
    %c0_24 = arith.constant 0 : index
    %c0_25 = arith.constant 0 : index
    %50 = vector.load %arg6[%c0_24, %c0_25] : memref<4x512xf32, #tpu.memory_space<vmem>>, vector<4x512xf32>
    tpu.vector_store %arg6[%c0_24, %c0_25], %49 {strides = array<i32>} : memref<4x512xf32, #tpu.memory_space<vmem>>, vector<4x512xf32>,
    return
  }
}

</mosaic_0001>

<bundles_post_ra>
// kernel: residual_block.1
= control target key start
LH: loop header
LB: loop body
LE: loop exit
PB: predicated region body
PF: predicated region fallthrough
CT: control target
= control target key end

     0   :  { %vm172_vm2 = vcmask 1040384   ;;  %v795_v8 = vmov 1.0   ;;  %s797_s25 = smov 1   ;;  %v798_v13 = vmov 0.0   ;;  %s799_s26 = smov 17   ;;  %v27_v14 = vlaneseq  ;;  %s1079_s0 = inlined_call_operand.vmem [shape: f32[4,512], index: 0, kind: input, shape index: {}]   ;;  %s1080_s5 = inlined_call_operand.vmem [shape: f32[1,512], index: 5, kind: input, shape index: {}]   ;;  %s1081_s4 = inlined_call_operand.vmem [shape: f32[1,512], index: 4, kind: input, shape index: {}]   ;;  %s1082_s1 = inlined_call_operand.vmem [shape: f32[4,17], index: 1, kind: input, shape index: {}]   ;;  %s1083_s2 = inlined_call_operand.vmem [shape: f32[4,17], index: 2, kind: input, shape index: {}]   ;;  %s1084_s3 = inlined_call_operand.vmem [shape: f32[4,17], index: 3, kind: input, shape index: {}]   ;;  %s1085_s6 = inlined_call_operand.vmem [shape: f32[4,512], index: 6, kind: output, shape index: {}]  }
   0x1   :  { %v838_v0 = vld [vmem:[%s1079_s0 + $0x8] sm:$0xff]  ;;  %v843_v1 = vld [vmem:[%s1079_s0] sm:$0xff]  ;;  %748 = vmatprep.subr.msk.mxu0 %vm172_vm2, %v795_v8  ;;  %751 = vmatprep.subr.msk.mxu1 %vm172_vm2, %v795_v8  ;;  %s796_s0 = smov 16   ;;  %vm158_vm4 = vcmask 1043456   ;;  %vm168_vm7 = vcmask 138240  }
   0x2   :  { %v77_v2 = vmul.f32 1.442695, %v838_v0  ;;  %v75_v3 = vmul.f32 1.442695, %v843_v1  ;;  %vm74_vm0 = vcmp.gt.f32.partialorder %v838_v0, 0.0  ;;  %vm73_vm1 = vcmp.gt.f32.partialorder %v843_v1, 0.0  ;;  %749 = vmatpush1.msk.msra.mxu0 %vm172_vm2, %v795_v8  ;;  %752 = vmatpush1.msk.msra.mxu1 %vm172_vm2, %v795_v8 }
   0x3   :  { %240 = vmatprep.mubr.f32.mxu0 %v798_v13  ;;  %311 = vmatprep.mubr.f32.mxu1 %v798_v13  ;;  %v28_v16 = vshrl.u32 %v27_v14, 7  ;;  %v47_v19 = vld [vmem:[%s1080_s5] sm:$0xf]  ;;  %v890_v20 = vand.u32 127, %v27_v14 }
   0x4   :  { %775 = vpow2.f32 %v77_v2  ;;  %v25_v28 = vld [vmem:[%s1081_s4] sm:$0xf] }
   0x5   :  { %777 = vpow2.f32 %v75_v3  ;;  %v33_v18 = vsub.s32 1, %v28_v16  ;;  %v37_v23 = vsub.s32 2, %v28_v16  ;;  %vm133_vm3 = vcmp.lt.s32.totalorder %v890_v20, 1 }
   0x6   :  { %v29_v25 = vsub.s32 0, %v28_v16  ;;  %v41_v26 = vsub.s32 3, %v28_v16  ;;  %vm116_vm5 = vcmp.lt.s32.totalorder %v890_v20, 16  ;;  %vm99_vm6 = vcmp.lt.s32.totalorder %v890_v20, 17 }
   0x7   :  { %v892_v24 = vrot.slane %v47_v19, %v33_v18  ;;  %v898_v30 = vrot.slane %v47_v19, %v37_v23  ;;  %v914_v39 = vrot.slane %v25_v28, %v33_v18  ;;  %v934_v51 = vrot.slane %v25_v28, %v37_v23  ;;  %v167_v23 = vld [vmem:[%s1082_s1] sm:$0xf] }
   0x8   :  { %v905_v34 = vrot.slane %v47_v19, %v29_v25  ;;  %v907_v35 = vrot.slane %v47_v19, %v41_v26  ;;  %v910_v36 = vrot.slane %v25_v28, %v29_v25  ;;  %v925_v46 = vrot.slane %v25_v28, %v41_v26 }
   0x9   :  { %v938_v52 = vmul.f32 %v892_v24, %v914_v39 }
   0xa   :  { %v947_v59 = vmul.f32 %v905_v34, %v910_v36 }
  0x11   :  { %v776_v4 = vpop.eup %775 }
  0x12   :  { %v778_v5 = vpop.eup %777  ;;  %v747_v6 = vadd.f32 -1.0, %v776_v4  ;;  %v960_v4 = vmul.f32 %v898_v30, %v934_v51 }
  0x13   :  { %v746_v7 = vadd.f32 -1.0, %v778_v5  ;;  %v964_v5 = vmul.f32 %v907_v35, %v925_v46 }
  0x14   :  { %v854_v9 = vsel %vm74_vm0, %v838_v0, %v747_v6 }
  0x15   :  { %112 = vrot.lane.b32.xlu1 %v854_v9, %s796_s0  ;;  %v863_v10 = vsel %vm73_vm1, %v843_v1, %v746_v7  ;;  %v86_v11 = vcombine.high %v854_v9, %v854_v9  ;;  %v155_v45 = vcombine.low %v854_v9, %v854_v9 }
  0x16   :  { %108 = vrot.lane.b32.xlu0 %v863_v10, %s796_s0  ;;  %v85_v12 = vcombine.high %v863_v10, %v863_v10  ;;  %v154_v40 = vcombine.low %v863_v10, %v863_v10 }
  0x19   :  { %114 = vrot.lane.b32.xlu1 %v86_v11, %s796_s0 }
  0x1a   :  { %125 = vrot.lane.b32.xlu0 %v863_v10, %s797_s25 }
  0x1d   :  { %127 = vrot.lane.b32.xlu1 %v85_v12, %s797_s25 }
  0x1e   :  { %129 = vrot.lane.b32.xlu0 %v854_v9, %s797_s25 }
  0x21   :  { %131 = vrot.lane.b32.xlu1 %v86_v11, %s797_s25 }
  0x22   :  { %89 = vrot.lane.b32.xlu0 %v863_v10, %s799_s26 }
  0x25   :  { %91 = vrot.lane.b32.xlu1 %v85_v12, %s799_s26 }
  0x26   :  { %110 = vrot.lane.b32.xlu0 %v85_v12, %s796_s0 }
  0x29   :  { %95 = vrot.lane.b32.xlu1 %v86_v11, %s799_s26 }
  0x2a   :  { %93 = vrot.lane.b32.xlu0 %v854_v9, %s799_s26 }
  0x87   :  { %v113_v15 = vpop.permute.xlu1 %112 }
  0x88   :  { %v109_v17 = vpop.permute.xlu0 %108 }
  0x8b   :  { %v115_v21 = vpop.permute.xlu1 %114 }
  0x8c   :  { %v126_v22 = vpop.permute.xlu0 %125  ;;  %v120_v47 = vsel %vm116_vm5, %v115_v21, %v109_v17  ;;  %v117_v50 = vsel %vm116_vm5, %v113_v15, %v115_v21 }
  0x8d   :  { %v121_v56 = vmul.f32 %v120_v47, %v910_v36  ;;  %v124_v60 = vmul.f32 %v117_v50, %v925_v46 }
  0x8f   :  { %v128_v27 = vpop.permute.xlu1 %127  ;;  %v146_v7 = vrot.slane %v121_v56, 4  ;;  %v149_v14 = vrot.slane %v124_v60, 4 }
  0x90   :  { %v130_v29 = vpop.permute.xlu0 %129  ;;  %v136_v31 = vsel %vm133_vm3, %v126_v22, %v128_v27 }
  0x91   :  { %v135_v32 = vsel %vm133_vm3, %v128_v27, %v130_v29  ;;  %v139_v33 = vmul.f32 %v136_v31, %v892_v24 }
  0x92   :  { %v140_v41 = vmul.f32 %v135_v32, %v898_v30 }
  0x93   :  { %v132_v37 = vpop.permute.xlu1 %131  ;;  %v164_v38 = vsel %vm158_vm4, %v139_v33, %v863_v10 }
  0x94   :  { %v90_v42 = vpop.permute.xlu0 %89  ;;  %v134_v43 = vsel %vm133_vm3, %v130_v29, %v132_v37  ;;  %v137_v44 = vsel %vm133_vm3, %v132_v37, %v126_v22  ;;  %204 = vmatprep.subr.mxu0 %v164_v38  ;;  %v165_v58 = vsel %vm158_vm4, %v140_v41, %v155_v45 }
  0x95   :  { %v138_v48 = vmul.f32 %v137_v44, %v905_v34  ;;  %v141_v49 = vmul.f32 %v134_v43, %v907_v35 }
  0x97   :  { %v92_v53 = vpop.permute.xlu1 %91  ;;  %v163_v54 = vsel %vm158_vm4, %v138_v48, %v154_v40  ;;  %v166_v55 = vsel %vm158_vm4, %v141_v49, %v854_v9 }
  0x98   :  { %v111_v57 = vpop.permute.xlu0 %110  ;;  %205 = vmatpush1.msra.mxu0 %v163_v54  ;;  %275 = vmatprep.subr.mxu1 %v166_v55  ;;  %v102_v61 = vsel %vm99_vm6, %v90_v42, %v92_v53 }
  0x99   :  { %v118_v62 = vsel %vm116_vm5, %v111_v57, %v113_v15  ;;  %v119_v63 = vsel %vm116_vm5, %v109_v17, %v111_v57  ;;  %276 = vmatpush1.msra.mxu1 %v165_v58  ;;  %v105_v9 = vmul.f32 %v102_v61, %v938_v52 }
  0x9a   :  { %v122_v2 = vmul.f32 %v119_v63, %v914_v39  ;;  %v123_v3 = vmul.f32 %v118_v62, %v934_v51 }
  0x9b   :  { %v96_v6 = vpop.permute.xlu1 %95 }
  0x9c   :  { %v147_v10 = vrot.slane %v122_v2, 4  ;;  %v103_v11 = vsel %vm99_vm6, %v96_v6, %v90_v42  ;;  %v94_v12 = vpop.permute.xlu0 %93  ;;  %v148_v18 = vrot.slane %v123_v3, 4 }
  0x9d   :  { %v104_v15 = vmul.f32 %v103_v11, %v947_v59  ;;  %v100_v16 = vsel %vm99_vm6, %v94_v12, %v96_v6  ;;  %v101_v17 = vsel %vm99_vm6, %v92_v53, %v94_v12 }
  0x9e   :  { %v106_v19 = vmul.f32 %v101_v17, %v960_v4  ;;  %v107_v21 = vmul.f32 %v100_v16, %v964_v5  ;;  %v160_v22 = vsel %vm158_vm4, %v105_v9, %v147_v10 }
  0x9f   :  { %206 = vmatprep.subr.mxu0 %v160_v22  ;;  %v159_v25 = vsel %vm158_vm4, %v104_v15, %v146_v7 }
  0xa0   :  { %207 = vmatpush1.msra.mxu0 %v159_v25  ;;  %v162_v26 = vsel %vm158_vm4, %v107_v21, %v149_v14  ;;  %v161_v27 = vsel %vm158_vm4, %v106_v19, %v148_v18 }
  0xa1   :  { %277 = vmatprep.subr.mxu1 %v162_v26  ;;  %750 = vmatmul.mubr.msk.f32.vlgmr.msra.gmra.mxu0 %vm168_vm7, %v167_v23 }
  0xa2   :  { %278 = vmatpush1.msra.mxu1 %v161_v27  ;;  %758 = vmatprep.subr.msk.mxu0 %vm172_vm2, %v795_v8 }
  0xa3   :  { %753 = vmatmul.mubr.msk.f32.vlgmr.msra.gmra.mxu1 %vm168_vm7, %v167_v23  ;;  %759 = vmatpush1.msk.msra.mxu0 %vm172_vm2, %v795_v8 }
  0xa4   :  { %761 = vmatprep.subr.msk.mxu1 %vm172_vm2, %v795_v8  ;;  %486 = vmatprep.mubr.f32.mxu0 %v798_v13 }
  0xa5   :  { %762 = vmatpush1.msk.msra.mxu1 %vm172_vm2, %v795_v8  ;;  %557 = vmatprep.mubr.f32.mxu1 %v798_v13 }
 0x161   :  { %v242_v28 = vpop.f32.mrf.mxu0 }
 0x162   :  { %v322_v29 = vmul.f32 1.442695, %v242_v28  ;;  %vm318_vm8 = vcmp.gt.f32.partialorder %v242_v28, 0.0 }
 0x163   :  { %v313_v31 = vpop.f32.mrf.mxu1  ;;  %v244_v32 = vpop.f32.mrf.mxu0 }
 0x164   :  { %779 = vpow2.f32 %v322_v29  ;;  %v326_v33 = vmul.f32 1.442695, %v313_v31  ;;  %v324_v37 = vmul.f32 1.442695, %v244_v32  ;;  %vm319_vm9 = vcmp.gt.f32.partialorder %v244_v32, 0.0 }
 0x165   :  { %v315_v38 = vpop.f32.mrf.mxu1  ;;  %vm320_vm10 = vcmp.gt.f32.partialorder %v313_v31, 0.0 }
 0x166   :  { %781 = vpow2.f32 %v326_v33  ;;  %v328_v40 = vmul.f32 1.442695, %v315_v38  ;;  %vm321_vm11 = vcmp.gt.f32.partialorder %v315_v38, 0.0 }
 0x167   :  { %783 = vpow2.f32 %v324_v37 }
 0x168   :  { %785 = vpow2.f32 %v328_v40 }
 0x171   :  { %v780_v41 = vpop.eup %779 }
 0x172   :  { %v754_v42 = vadd.f32 -1.0, %v780_v41 }
 0x173   :  { %v782_v43 = vpop.eup %781 }
 0x174   :  { %v784_v44 = vpop.eup %783  ;;  %v756_v45 = vadd.f32 -1.0, %v782_v43  ;;  %v334_v47 = vsel %vm318_vm8, %v242_v28, %v754_v42 }
 0x175   :  { %v786_v48 = vpop.eup %785  ;;  %v755_v49 = vadd.f32 -1.0, %v784_v44  ;;  %354 = vrot.lane.b32.xlu0 %v334_v47, %s796_s0 }
 0x176   :  { %v757_v50 = vadd.f32 -1.0, %v786_v48  ;;  %v336_v54 = vsel %vm320_vm10, %v313_v31, %v756_v45 }
 0x177   :  { %v335_v53 = vsel %vm319_vm9, %v244_v32, %v755_v49  ;;  %v404_v22 = vrot.slane %v336_v54, 4 }
 0x178   :  { %356 = vrot.lane.b32.xlu1 %v335_v53, %s796_s0  ;;  %v337_v55 = vsel %vm321_vm11, %v315_v38, %v757_v50  ;;  %v403_v9 = vrot.slane %v335_v53, 4 }
 0x179   :  { %358 = vrot.lane.b32.xlu0 %v336_v54, %s796_s0  ;;  %v405_v21 = vrot.slane %v337_v55, 4 }
 0x17c   :  { %360 = vrot.lane.b32.xlu1 %v337_v55, %s796_s0 }
 0x17d   :  { %370 = vrot.lane.b32.xlu0 %v334_v47, %s797_s25 }
 0x180   :  { %372 = vrot.lane.b32.xlu1 %v335_v53, %s797_s25 }
 0x181   :  { %374 = vrot.lane.b32.xlu0 %v336_v54, %s797_s25 }
 0x184   :  { %376 = vrot.lane.b32.xlu1 %v337_v55, %s797_s25 }
 0x185   :  { %338 = vrot.lane.b32.xlu0 %v334_v47, %s799_s26 }
 0x188   :  { %340 = vrot.lane.b32.xlu1 %v335_v53, %s799_s26 }
 0x189   :  { %342 = vrot.lane.b32.xlu0 %v336_v54, %s799_s26 }
 0x18c   :  { %344 = vrot.lane.b32.xlu1 %v337_v55, %s799_s26 }
 0x1e7   :  { %v355_v56 = vpop.permute.xlu0 %354 }
 0x1ea   :  { %v357_v57 = vpop.permute.xlu1 %356 }
 0x1eb   :  { %v359_v58 = vpop.permute.xlu0 %358  ;;  %v364_v3 = vsel %vm116_vm5, %v355_v56, %v357_v57 }
 0x1ec   :  { %v367_v12 = vmul.f32 %v364_v3, %v914_v39  ;;  %v363_v23 = vsel %vm116_vm5, %v357_v57, %v359_v58 }
 0x1ed   :  { %v368_v38 = vmul.f32 %v363_v23, %v934_v51  ;;  %v418_v51 = vld [vmem:[%s1083_s2] sm:$0xf] }
 0x1ee   :  { %v361_v60 = vpop.permute.xlu1 %360  ;;  %v391_v28 = vrot.slane %v367_v12, 4 }
 0x1ef   :  { %v371_v61 = vpop.permute.xlu0 %370  ;;  %v362_v39 = vsel %vm116_vm5, %v359_v58, %v361_v60 }
 0x1f0   :  { %v369_v32 = vmul.f32 %v362_v39, %v925_v46 }
 0x1f2   :  { %v373_v62 = vpop.permute.xlu1 %372 }
 0x1f3   :  { %v380_v63 = vsel %vm133_vm3, %v371_v61, %v373_v62  ;;  %v375_v2 = vpop.permute.xlu0 %374 }
 0x1f4   :  { %v383_v6 = vmul.f32 %v380_v63, %v892_v24  ;;  %v379_v7 = vsel %vm133_vm3, %v373_v62, %v375_v2  ;;  %v402_v24 = vrot.slane %v334_v47, 4  ;;  %v392_v47 = vrot.slane %v368_v38, 4 }
 0x1f5   :  { %v384_v14 = vmul.f32 %v379_v7, %v898_v30  ;;  %v365_v30 = vsel %vm116_vm5, %v361_v60, %v355_v56 }
 0x1f6   :  { %v377_v10 = vpop.permute.xlu1 %376  ;;  %v415_v11 = vsel %vm158_vm4, %v383_v6, %v403_v9  ;;  %v366_v31 = vmul.f32 %v365_v30, %v910_v36 }
 0x1f7   :  { %v378_v15 = vsel %vm133_vm3, %v375_v2, %v377_v10  ;;  %v381_v16 = vsel %vm133_vm3, %v377_v10, %v371_v61  ;;  %450 = vmatprep.subr.mxu0 %v415_v11  ;;  %v339_v17 = vpop.permute.xlu0 %338 }
 0x1f8   :  { %v382_v18 = vmul.f32 %v381_v16, %v905_v34  ;;  %v385_v19 = vmul.f32 %v378_v15, %v907_v35  ;;  %v416_v35 = vsel %vm158_vm4, %v384_v14, %v404_v22  ;;  %v390_v46 = vrot.slane %v366_v31, 4 }
 0x1fa   :  { %v341_v25 = vpop.permute.xlu1 %340  ;;  %v414_v26 = vsel %vm158_vm4, %v382_v18, %v402_v24  ;;  %v417_v27 = vsel %vm158_vm4, %v385_v19, %v405_v21 }
 0x1fb   :  { %v348_v34 = vsel %vm99_vm6, %v339_v17, %v341_v25  ;;  %451 = vmatpush1.msra.mxu0 %v414_v26  ;;  %521 = vmatprep.subr.mxu1 %v417_v27  ;;  %v343_v29 = vpop.permute.xlu0 %342 }
 0x1fc   :  { %v351_v33 = vmul.f32 %v348_v34, %v938_v52  ;;  %522 = vmatpush1.msra.mxu1 %v416_v35  ;;  %v347_v37 = vsel %vm99_vm6, %v341_v25, %v343_v29  ;;  %v393_v52 = vrot.slane %v369_v32, 4 }
 0x1fd   :  { %v352_v42 = vmul.f32 %v347_v37, %v960_v4 }
 0x1fe   :  { %v345_v40 = vpop.permute.xlu1 %344  ;;  %v411_v41 = vsel %vm158_vm4, %v351_v33, %v391_v28 }
 0x1ff   :  { %v346_v43 = vsel %vm99_vm6, %v343_v29, %v345_v40  ;;  %v349_v36 = vsel %vm99_vm6, %v345_v40, %v339_v17  ;;  %452 = vmatprep.subr.mxu0 %v411_v41  ;;  %v412_v20 = vsel %vm158_vm4, %v352_v42, %v392_v47 }
 0x200   :  { %v350_v44 = vmul.f32 %v349_v36, %v947_v59  ;;  %v353_v45 = vmul.f32 %v346_v43, %v964_v5  ;;  %v564_v59 = vld [vmem:[%s1084_s3] sm:$0xf] }
 0x202   :  { %v410_v4 = vsel %vm158_vm4, %v350_v44, %v390_v46  ;;  %v413_v48 = vsel %vm158_vm4, %v353_v45, %v393_v52 }
 0x203   :  { %453 = vmatpush1.msra.mxu0 %v410_v4  ;;  %523 = vmatprep.subr.mxu1 %v413_v48 }
 0x204   :  { %760 = vmatmul.mubr.msk.f32.vlgmr.msra.gmra.mxu0 %vm168_vm7, %v418_v51  ;;  %524 = vmatpush1.msra.mxu1 %v412_v20 }
 0x205   :  { %764 = vmatprep.subr.msk.mxu0 %vm172_vm2, %v795_v8  ;;  %763 = vmatmul.mubr.msk.f32.vlgmr.msra.gmra.mxu1 %vm168_vm7, %v418_v51 }
 0x206   :  { %765 = vmatpush1.msk.msra.mxu0 %vm172_vm2, %v795_v8  ;;  %767 = vmatprep.subr.msk.mxu1 %vm172_vm2, %v795_v8 }
 0x207   :  { %596 = vmatprep.subr.mxu0 %v415_v11  ;;  %768 = vmatpush1.msk.msra.mxu1 %vm172_vm2, %v795_v8 }
 0x208   :  { %597 = vmatpush1.msra.mxu0 %v414_v26  ;;  %667 = vmatprep.subr.mxu1 %v417_v27 }
 0x209   :  { %598 = vmatprep.subr.mxu0 %v411_v41  ;;  %668 = vmatpush1.msra.mxu1 %v416_v35 }
 0x20a   :  { %599 = vmatpush1.msra.mxu0 %v410_v4  ;;  %632 = vmatprep.mubr.f32.mxu0 %v798_v13 }
 0x20b   :  { %669 = vmatprep.subr.mxu1 %v413_v48  ;;  %766 = vmatmul.mubr.msk.f32.vlgmr.msra.gmra.mxu0 %vm168_vm7, %v564_v59 }
 0x20c   :  { %670 = vmatpush1.msra.mxu1 %v412_v20  ;;  %703 = vmatprep.mubr.f32.mxu1 %v798_v13 }
 0x20d   :  { %769 = vmatmul.mubr.msk.f32.vlgmr.msra.gmra.mxu1 %vm168_vm7, %v564_v59 }
 0x2c4   :  { %v488_v8 = vpop.f32.mrf.mxu0 }
 0x2c5   :  { %v559_v5 = vpop.f32.mrf.mxu1 }
 0x2c6   :  { %v490_v49 = vpop.f32.mrf.mxu0 }
 0x2c7   :  { %v561_v50 = vpop.f32.mrf.mxu1 }
 0x2cb   :  { %v634_v53 = vpop.f32.mrf.mxu0 }
 0x2cc   :  { %v710_v54 = vmul.f32 0.5, %v634_v53 }
 0x2cd   :  { %v705_v55 = vpop.f32.mrf.mxu1  ;;  %v636_v56 = vpop.f32.mrf.mxu0 }
 0x2ce   :  { %787 = vtanh.f32 %v710_v54  ;;  %v712_v57 = vmul.f32 0.5, %v705_v55  ;;  %v711_v58 = vmul.f32 0.5, %v636_v56 }
 0x2cf   :  { %v707_v60 = vpop.f32.mrf.mxu1 }
 0x2d0   :  { %789 = vtanh.f32 %v712_v57  ;;  %v713_v61 = vmul.f32 0.5, %v707_v60 }
 0x2d1   :  { %791 = vtanh.f32 %v711_v58 }
 0x2d2   :  { %793 = vtanh.f32 %v713_v61 }
 0x2db   :  { %v788_v62 = vpop.eup %787 }
 0x2dc   :  { %v718_v13 = vmul.f32 0.5, %v788_v62 }
 0x2dd   :  { %v790_v63 = vpop.eup %789 }
 0x2de   :  { %v792_v2 = vpop.eup %791  ;;  %v720_v3 = vmul.f32 0.5, %v790_v63  ;;  %v722_v7 = vadd.f32 0.5, %v718_v13 }
 0x2df   :  { %v794_v6 = vpop.eup %793  ;;  %v719_v9 = vmul.f32 0.5, %v792_v2 }
 0x2e0   :  { %v724_v10 = vadd.f32 0.5, %v720_v3  ;;  %v721_v11 = vmul.f32 0.5, %v794_v6  ;;  %v726_v15 = vmul.f32 %v722_v7, %v488_v8 }
 0x2e1   :  { %v723_v12 = vadd.f32 0.5, %v719_v9 }
 0x2e2   :  { %v725_v14 = vadd.f32 0.5, %v721_v11  ;;  %v728_v17 = vmul.f32 %v724_v10, %v559_v5 }
 0x2e3   :  { %v727_v16 = vmul.f32 %v723_v12, %v490_v49 }
 0x2e4   :  { %v729_v24 = vmul.f32 %v725_v14, %v561_v50 }
 0x2e5   :  { %v734_v18 = vcombine.low %v726_v15, %v727_v16 }
 0x2e6   :  { %v735_v19 = vcombine.low %v728_v17, %v729_v24 }
 0x2e7   :  { %v738_v21 = vadd.f32 %v734_v18, %v843_v1 }
 0x2e8   :  { %v739_v22 = vadd.f32 %v735_v19, %v838_v0 }
 0x2e9   :  { %740 = vst [vmem:[%s1085_s6] sm:$0xff] %v738_v21 }
 0x2ea   :  { %741 = vst [vmem:[%s1085_s6 + $0x8] sm:$0xff] %v739_v22 }

</bundles_post_ra>
